<compile_context>
chip_gen: v7x
topology: tpu7x:2x2x1
jax: 0.10.0
libtpu: 0.0.40
codegen_flags: <defaults>
</compile_context>

<pallas_src>
import functools

import jax
import jax.numpy as jnp
from jax.experimental import pallas as pl
from jax.experimental.pallas import tpu as pltpu


def _round_up(x, m):
    return ((x + m - 1) // m) * m


def _alignment_kernel(x_ref, y_ref, out_ref, acc_ref, *,
                      block_rows, total_rows, steps_per_split):
    """Accumulate sum((y - x)^2) over this split's row tiles."""
    c = pl.program_id(0)          # split (TensorCore) index
    k = pl.program_id(1)          # row-tile index within the split

    @pl.when(k == 0)
    def _():
        acc_ref[...] = jnp.zeros_like(acc_ref)

    # Unclamped global row offset of this tile.  Rows >= total_rows are either
    # the ragged tail of the last tile or overrun steps whose index_map was
    # clamped -- both must be masked out before squaring.
    row_start = (c * steps_per_split + k) * block_rows
    row_ids = row_start + jax.lax.broadcasted_iota(jnp.int32, x_ref.shape, 0)
    valid = row_ids < total_rows

    diff = y_ref[...].astype(jnp.float32) - x_ref[...].astype(jnp.float32)
    diff = jnp.where(valid, diff, 0.0)
    # TODO(synk): if bundle dumps ever show VMEM spills at very large tiles,
    # split this reduce into a short unrolled fori_loop over sublane chunks.
    acc_ref[...] += jnp.sum(diff * diff, axis=0, keepdims=True)

    @pl.when(k == pl.num_programs(1) - 1)
    def _():
        out_ref[...] = jnp.broadcast_to(jnp.sum(acc_ref[...]), out_ref.shape)


def alignment_loss(latents, similar_latents, *, max_rows_per_tile=None,
                   force_pallas=False):
    """((similar_latents - latents) ** 2).sum(dim=1).mean() as a scalar f32."""
    n, d = latents.shape
    assert similar_latents.shape == (n, d), (latents.shape, similar_latents.shape)
    assert n >= 1
    itemsize = jnp.dtype(latents.dtype).itemsize

    # Tiny inputs: pallas_call / grid-step overhead dominates; XLA fusion wins.
    if not force_pallas and 2 * n * d * itemsize < (256 << 10):
        diff = similar_latents.astype(jnp.float32) - latents.astype(jnp.float32)
        return jnp.sum(diff * diff) / jnp.float32(n)

    # ---- Choose a lane-dense flat view (free reshape; no HBM padding). ----
    total = n * d
    w = d
    for cand in (512, 256, 128):
        if total % cand == 0:
            w = cand
            break
    if w == d:
        x2, y2 = latents, similar_latents        # stream with the true D
        r = n
    else:
        r = total // w
        x2 = latents.reshape(r, w)               # contiguous row-major -> ~free
        y2 = similar_latents.reshape(r, w)

    # ---- VMEM budget & row tile. ----
    try:
        vmem_cap = int(pltpu.get_tpu_info().vmem_capacity_bytes)
    except Exception:  # conservative default if the query is unavailable
        vmem_cap = 64 * 1024 * 1024
    vmem_limit = int(min(64 * 1024 * 1024, (3 * vmem_cap) // 4))

    # Per-input tile budget: 2 inputs x 2 pipeline buffers + f32 temporaries
    # must stay well under vmem_limit.  VMEM footprint uses the lane-padded
    # width, not the true width.
    w_vmem = _round_up(w, 128)
    tile_budget = min(8 * 1024 * 1024, vmem_limit // 8)
    sub = 32 // itemsize                # sublane multiple: f32 8, bf16 16, i8 32
    tn = max(sub, tile_budget // (w_vmem * itemsize))
    if max_rows_per_tile is not None:
        tn = min(tn, max_rows_per_tile)
    if r <= sub:
        tn = r                          # single (full-extent) partial block
    else:
        tn = max(sub, (min(tn, r) // sub) * sub)

    num_blocks = pl.cdiv(r, tn)
    num_splits = 2 if num_blocks >= 2 else 1     # use both v7x TensorCores
    steps = pl.cdiv(num_blocks, num_splits)

    def in_map(c, k):
        # Clamp so overrun steps of the second split never DMA out of range;
        # their rows are masked to zero contribution inside the kernel.
        return (jnp.minimum(c * steps + k, num_blocks - 1), 0)

    kernel = functools.partial(
        _alignment_kernel,
        block_rows=tn, total_rows=r, steps_per_split=steps)

    cost = pl.CostEstimate(
        flops=3 * total,
        transcendentals=0,
        bytes_accessed=2 * total * itemsize + num_splits * 8 * 128 * 4)

    out = pl.pallas_call(
        kernel,
        out_shape=jax.ShapeDtypeStruct((num_splits * 8, 128), jnp.float32),
        grid_spec=pltpu.PrefetchScalarGridSpec(
            num_scalar_prefetch=0,
            grid=(num_splits, steps),
            in_specs=[
                pl.BlockSpec((tn, w), in_map),
                pl.BlockSpec((tn, w), in_map),
            ],
            out_specs=pl.BlockSpec((8, 128), lambda c, k: (c, 0)),
            scratch_shapes=[pltpu.VMEM((1, w), jnp.float32)],
        ),
        compiler_params=pltpu.CompilerParams(
            dimension_semantics=("parallel", "arbitrary"),
            vmem_limit_bytes=vmem_limit,
        ),
        cost_estimate=cost,
    )(x2, y2)

    # One partial sum per split (broadcast across its 8x128 block); add them.
    partials = out[0::8, 0]
    return jnp.sum(partials) * jnp.float32(1.0 / n)


if __name__ == "__main__":
    key = jax.random.PRNGKey(0)

    def ref_loss(x, y):
        dd = y.astype(jnp.float32) - x.astype(jnp.float32)
        return jnp.mean(jnp.sum(dd * dd, axis=1))

    # Case 1: small latents (batch=8, hidden=32), the shape implied by the module.
    k1, k2 = jax.random.split(key)
    x = jax.random.normal(k1, (8, 32), dtype=jnp.float32)
    y = jax.random.normal(k2, (8, 32), dtype=jnp.float32)
    loss = alignment_loss(x, y, force_pallas=True)
    jax.block_until_ready(loss)
    assert jnp.allclose(loss, ref_loss(x, y), rtol=1e-5, atol=1e-5), (loss, ref_loss(x, y))

    # Case 2: ragged row count + odd number of row tiles + 2-way split + clamp.
    k3, k4 = jax.random.split(k1)
    x = jax.random.normal(k3, (40, 256), dtype=jnp.float32)
    y = jax.random.normal(k4, (40, 256), dtype=jnp.float32)
    loss = alignment_loss(x, y, max_rows_per_tile=8, force_pallas=True)
    jax.block_until_ready(loss)
    assert jnp.allclose(loss, ref_loss(x, y), rtol=1e-4, atol=1e-4), (loss, ref_loss(x, y))

    # Case 3: bf16 inputs with a feature dim that is not a multiple of 128
    # (exercises the true-D streaming path and the bf16 sublane multiple).
    k5, k6 = jax.random.split(k2)
    x = jax.random.normal(k5, (48, 50), dtype=jnp.bfloat16)
    y = jax.random.normal(k6, (48, 50), dtype=jnp.bfloat16)
    loss = alignment_loss(x, y, max_rows_per_tile=16, force_pallas=True)
    jax.block_until_ready(loss)
    assert jnp.allclose(loss, ref_loss(x, y), rtol=1e-3, atol=1e-3), (loss, ref_loss(x, y))

    print("KERNEL_OK")
</pallas_src>

<mosaic_0001>
module attributes {stable_mosaic.version = 11 : i64} {
  func.func @_alignment_kernel(%arg0: i32, %arg1: i32, %arg2: memref<1x256xf32, #tpu.memory_space<vmem>>, %arg3: memref<1x256xf32, #tpu.memory_space<vmem>>, %arg4: memref<8x128xf32, #tpu.memory_space<vmem>>, %arg5: memref<1x256xf32, #tpu.memory_space<vmem>>) attributes {dimension_semantics = [#tpu.dimension_semantics<parallel>, #tpu.dimension_semantics<arbitrary>], iteration_bounds = array<i64: 1, 1>, scalar_prefetch = 0 : i64, scratch_operands = 1 : i64, tpu.core_type = #tpu.core_type<tc>, window_params = [{transform_indices = @transform_0, window_bounds = array<i64: 1, 256>}, {transform_indices = @transform_1, window_bounds = array<i64: 1, 256>}, {transform_indices = @transform_2, window_bounds = array<i64: 8, 128>}]} {
    %c0_i32 = arith.constant 0 : i32
    %0 = arith.cmpi eq, %arg1, %c0_i32 : i32
    %1 = arith.extui %0 : i1 to i32
    %c0_i32_0 = arith.constant 0 : i32
    %2 = arith.cmpi ne, %1, %c0_i32_0 : i32
    scf.if %2 {
      %cst_13 = arith.constant 0.000000e+00 : f32
      %25 = vector.broadcast %cst_13 : f32 to vector<1x256xf32>
      %c0_14 = arith.constant 0 : index
      %c0_15 = arith.constant 0 : index
      %26 = vector.load %arg5[%c0_14, %c0_15] : memref<1x256xf32, #tpu.memory_space<vmem>>, vector<1x256xf32>
      tpu.vector_store %arg5[%c0_14, %c0_15], %25 {strides = array<i32>} : memref<1x256xf32, #tpu.memory_space<vmem>>, vector<1x256xf32>,
    } else {
    }
    %c1_i32 = arith.constant 1 : i32
    %3 = arith.muli %arg0, %c1_i32 : i32
    %4 = arith.addi %3, %arg1 : i32
    %c1_i32_1 = arith.constant 1 : i32
    %5 = arith.muli %4, %c1_i32_1 : i32
    %6 = tpu.iota {dimensions = array<i32: 0>} : vector<1x256xi32>
    %7 = vector.broadcast %5 : i32 to vector<1x256xi32>
    %8 = arith.addi %7, %6 : vector<1x256xi32>
    %c1_i32_2 = arith.constant 1 : i32
    %9 = vector.broadcast %c1_i32_2 : i32 to vector<1x256xi32>
    %10 = arith.cmpi slt, %8, %9 : vector<1x256xi32>
    %c0 = arith.constant 0 : index
    %c0_3 = arith.constant 0 : index
    %11 = vector.load %arg3[%c0, %c0_3] : memref<1x256xf32, #tpu.memory_space<vmem>>, vector<1x256xf32>
    %c0_4 = arith.constant 0 : index
    %c0_5 = arith.constant 0 : index
    %12 = vector.load %arg2[%c0_4, %c0_5] : memref<1x256xf32, #tpu.memory_space<vmem>>, vector<1x256xf32>
    %13 = arith.subf %11, %12 : vector<1x256xf32>
    %cst = arith.constant 0.000000e+00 : f32
    %14 = vector.broadcast %cst : f32 to vector<1x256xf32>
    %15 = arith.select %10, %13, %14 : vector<1x256xi1>, vector<1x256xf32>
    %c0_6 = arith.constant 0 : index
    %c0_7 = arith.constant 0 : index
    %16 = vector.load %arg5[%c0_6, %c0_7] : memref<1x256xf32, #tpu.memory_space<vmem>>, vector<1x256xf32>
    %17 = arith.mulf %15, %15 : vector<1x256xf32>
    %cst_8 = arith.constant dense<0.000000e+00> : vector<256xf32>
    %18 = vector.multi_reduction <add>, %17, %cst_8 [0] : vector<1x256xf32> to vector<256xf32>
    %19 = vector.shape_cast %18 : vector<256xf32> to vector<1x256xf32>
    %20 = arith.addf %16, %19 : vector<1x256xf32>
    %c0_9 = arith.constant 0 : index
    %c0_10 = arith.constant 0 : index
    %21 = vector.load %arg5[%c0_9, %c0_10] : memref<1x256xf32, #tpu.memory_space<vmem>>, vector<1x256xf32>
    tpu.vector_store %arg5[%c0_9, %c0_10], %20 {strides = array<i32>} : memref<1x256xf32, #tpu.memory_space<vmem>>, vector<1x256xf32>,
    %c0_i32_11 = arith.constant 0 : i32
    %22 = arith.cmpi eq, %arg1, %c0_i32_11 : i32
    %23 = arith.extui %22 : i1 to i32
    %c0_i32_12 = arith.constant 0 : i32
    %24 = arith.cmpi ne, %23, %c0_i32_12 : i32
    scf.if %24 {
      %c0_13 = arith.constant 0 : index
      %c0_14 = arith.constant 0 : index
      %25 = vector.load %arg5[%c0_13, %c0_14] : memref<1x256xf32, #tpu.memory_space<vmem>>, vector<1x256xf32>
      %26 = vector.shape_cast %25 : vector<1x256xf32> to vector<1x1x256xf32>
      %cst_15 = arith.constant dense<0.000000e+00> : vector<1xf32>
      %27 = vector.multi_reduction <add>, %26, %cst_15 [1, 2] : vector<1x1x256xf32> to vector<1xf32>
      %28 = vector.shape_cast %27 : vector<1xf32> to vector<1x1x1xf32>
      %29 = vector.extract %28[0, 0, 0] : f32 from vector<1x1x1xf32>
      %30 = vector.broadcast %29 : f32 to vector<8x128xf32>
      %c0_16 = arith.constant 0 : index
      %c0_17 = arith.constant 0 : index
      %31 = vector.load %arg4[%c0_16, %c0_17] : memref<8x128xf32, #tpu.memory_space<vmem>>, vector<8x128xf32>
      tpu.vector_store %arg4[%c0_16, %c0_17], %30 {strides = array<i32>} : memref<8x128xf32, #tpu.memory_space<vmem>>, vector<8x128xf32>,
    } else {
    }
    return
  }
  func.func @transform_0(%arg0: i32, %arg1: i32) -> (i32, i32) {
    %c1_i32 = arith.constant 1 : i32
    %0 = arith.muli %arg0, %c1_i32 : i32
    %1 = arith.addi %0, %arg1 : i32
    %c0_i32 = arith.constant 0 : i32
    %2 = arith.minsi %1, %c0_i32 : i32
    %c0_i32_0 = arith.constant 0 : i32
    %c0_i32_1 = arith.constant 0 : i32
    return %2, %c0_i32_0 : i32, i32
  }
  func.func @transform_1(%arg0: i32, %arg1: i32) -> (i32, i32) {
    %c1_i32 = arith.constant 1 : i32
    %0 = arith.muli %arg0, %c1_i32 : i32
    %1 = arith.addi %0, %arg1 : i32
    %c0_i32 = arith.constant 0 : i32
    %2 = arith.minsi %1, %c0_i32 : i32
    %c0_i32_0 = arith.constant 0 : i32
    %c0_i32_1 = arith.constant 0 : i32
    return %2, %c0_i32_0 : i32, i32
  }
  func.func @transform_2(%arg0: i32, %arg1: i32) -> (i32, i32) {
    %c0_i32 = arith.constant 0 : i32
    %c0_i32_0 = arith.constant 0 : i32
    return %arg0, %c0_i32 : i32, i32
  }
}

</mosaic_0001>

<bundles_post_ra>
// kernel: tpu_custom_call.1
= control target key start
LH: loop header
LB: loop body
LE: loop exit
PB: predicated region body
PF: predicated region fallthrough
CT: control target
= control target key end

     0   :  { %7 = vsyncpa [#allocation4], 0  ;;  %s281_s0 = inlined_call_operand.hbm [shape: f32[1,256], index: 0, kind: input, shape index: {}]   ;;  %s282_s1 = inlined_call_operand.vmem [shape: f32[1,256], index: 1, kind: input, shape index: {}]   ;;  %s283_s2 = inlined_call_operand.hbm [shape: f32[8,128], index: 2, kind: output, shape index: {}]  }
   0x1   :  { %8 = vsyncpa [#allocation5], 0  ;;  %s227_s9 = smov [#allocation3]   ;;  %s179_s13 = scalar_lea.hbm %s281_s0, 32 }
   0x2   :  { %s21_s10 = sshll.u32 %s227_s9, 4  ;;  %p180_p0 = scmp.ne.s32.totalorder %s281_s0, %s179_s13  ;;  %s22_s10 = int_to_ptr.vmem [resolvable:$true] %s21_s10 }
   0x3   :  { %p183_p1 = scmp.lt.u32.totalorder %s179_s13, %s281_s0 }
   0x5   :  { %p185_p2 = pnand %p183_p1, %p180_p0 }
   0x7   :  { %188 = shalt.err (!%p185_p2)
}
   0x8   :  { %s189_s18 = scalar_lea.vmem %s22_s10, 32  ;;  %p194_p4 = scmp.lt.s32.totalorder %s22_s10, %s22_s10 }
   0x9   :  { %p190_p3 = scmp.ne.s32.totalorder %s22_s10, %s189_s18  ;;  %p195_p5 = scmp.lt.s32.totalorder %s189_s18, %s189_s18 }
   0xb   :  { %p196_p6 = por %p195_p5, %p194_p4 }
   0xd   :  { %p197_p7 = pnand %p196_p6, %p190_p3 }
   0xf   :  { %200 = shalt.err (!%p197_p7)
}
  0x10   :  { %24 = dma.hbm_to_vmem [thread:$0]  %s281_s0, 32, %s22_s10, [#allocation4]  }
  0x11   :  { %223 = dma.done.wait [#allocation4], 32  }
  0x12   :  { %224 = vsyncadd [#allocation4], 4294967264  ;;  %v64_v0 = vlaneseq  ;;  %v228_v3 = vmov 0.0   ;;  %v229_v4 = vmov 1966171168   ;;  %vm135_vm2 = vcmask 1040384  }
  0x13   :  { %v100_v5 = vunpack.c.l.s4 %v229_v4  ;;  %v75_v8 = vld [vmem:[%s282_s1] sm:$0x3]  ;;  %v76_v9 = vld [vmem:[#allocation3] sm:$0x3]  ;;  %s230_s0 = smov [#allocation6]  }
  0x14   :  { %vm258_vm0 = vcmp.lt.s32.totalorder %v64_v0, 256  ;;  %v71_v2 = vshrl.u32 %v64_v0, 7  ;;  %v77_v10 = vsub.f32 %v75_v8, %v76_v9  ;;  %s156_s1 = sshll.u32 %s230_s0, 4  ;;  %s157_s1 = int_to_ptr.vmem [resolvable:$true] %s156_s1 }
  0x15   :  { %68 = vst.msk [vmem:[#allocation2] sm:$0x3] %vm258_vm0, %v228_v3  ;;  %v101_v11 = vunpack.c.0.s8 %v100_v5  ;;  %s201_s24 = scalar_lea.vmem %s157_s1, 128  ;;  %p206_p9 = scmp.lt.s32.totalorder %s157_s1, %s157_s1 }
  0x16   :  { %v81_v6 = vsub.s32 0, %v71_v2  ;;  %v85_v7 = vsub.s32 1, %v71_v2  ;;  %vm74_vm1 = vcmp.lt.s32.totalorder %v71_v2, 1  ;;  %p202_p8 = scmp.ne.s32.totalorder %s157_s1, %s201_s24  ;;  %p207_p10 = scmp.lt.s32.totalorder %s201_s24, %s201_s24 }
  0x17   :  { %v104_v18 = vsub.s32 %v101_v11, %v71_v2 }
  0x18   :  { %v82_v12 = vrot.slane %v77_v10, %v81_v6  ;;  %v86_v13 = vrot.slane %v77_v10, %v85_v7  ;;  %p208_p11 = por %p207_p10, %p206_p9 }
  0x1a   :  { %v89_v14 = vsel %vm74_vm1, %v82_v12, 0.0  ;;  %v90_v15 = vsel %vm74_vm1, %v86_v13, 0.0  ;;  %p209_p12 = pnand %p208_p11, %p202_p8 }
  0x1b   :  { %v92_v16 = vmul.f32 %v89_v14, %v89_v14  ;;  %v93_v17 = vmul.f32 %v90_v15, %v90_v15 }
  0x1c   :  { %v91_v21 = vld [vmem:[#allocation2] sm:$0x3] }
  0x1d   :  { %v98_v19 = vcombine.low %v92_v16, %v93_v17 }
  0x1f   :  { %v105_v20 = vrot.slane %v98_v19, %v104_v18 }
  0x21   :  { %v112_v22 = vrot.slane %v105_v20, %v104_v18 }
  0x23   :  { %v114_v23 = vadd.f32 %v112_v22, %v91_v21 }
  0x25   :  { %119 = vst.msk [vmem:[#allocation2] sm:$0x3] %vm258_vm0, %v114_v23 }
  0x2c   :  { %v123_v24 = vld [vmem:[#allocation2] sm:$0x3] }
  0x2d   :  { %v128_v25 = vrot.slane %v123_v24, %v81_v6  ;;  %v132_v26 = vrot.slane %v123_v24, %v85_v7 }
  0x2f   :  { %v136_v27 = vsel %vm135_vm2, %v128_v25, 0.0  ;;  %v137_v28 = vsel %vm135_vm2, %v132_v26, 0.0 }
  0x30   :  { %v138_v29 = vadd.f32 %v137_v28, %v136_v27 }
  0x32   :  { %139 = vadd.xlane.f32.xlu0 %v138_v29 }
  0xbf   :  { %v140_v30 = vpop.xlane.xlu0 %139 }
  0xc0   :  { %v141_v31 = vrot.slane %v140_v30, 4 }
  0xc2   :  { %v142_v32 = vadd.f32 %v141_v31, %v140_v30 }
  0xc4   :  { %v143_v33 = vrot.slane %v142_v32, 2 }
  0xc6   :  { %v144_v34 = vadd.f32 %v143_v33, %v142_v32 }
  0xc8   :  { %v145_v35 = vrot.slane %v144_v34, 1 }
  0xca   :  { %v146_v36 = vadd.f32 %v145_v35, %v144_v34 }
  0xcc   :  { %173 = vpush %v146_v36 }
  0xfd   :  { %s174_s23 = spop %173 }
  0xfe   :  { %v148_v37 = vstv %s174_s23 }
  0xff   :  { %149 = vst [vmem:[#allocation6] sm:$0xff] %v148_v37 }
 0x100   :  { %212 = shalt.err (!%p209_p12)
}
 0x101   :  { %s213_s27 = scalar_lea.hbm %s283_s2, 128 }
 0x102   :  { %p214_p13 = scmp.ne.s32.totalorder %s283_s2, %s213_s27  ;;  %p217_p0 = scmp.lt.u32.totalorder %s213_s27, %s283_s2 }
 0x104   :  { %p219_p1 = pnand %p217_p0, %p214_p13 }
 0x106   :  { %222 = shalt.err (!%p219_p1)
}
 0x107   :  { %159 = dma.vmem_to_hbm [thread:$0]  %s157_s1, 128, %s283_s2, [#allocation5]  }
 0x108   :  { %225 = dma.done.wait [#allocation5], 128  }
 0x109   :  { %226 = vsyncadd [#allocation5], 4294967168 }
 0x10a   :  { %163 = vsyncpa [#allocation4], 1 }
 0x10b   :  { %164 = vsyncpa [#allocation5], 1 }

</bundles_post_ra>
